<compile_context>
chip_gen: v5e
topology: v5e:2x2
jax: 0.10.0
libtpu: 0.0.40
codegen_flags: <defaults>
</compile_context>

<pallas_src>
import functools

import jax
import jax.numpy as jnp
from jax.experimental import pallas as pl
from jax.experimental.pallas import tpu as pltpu


def _round_up(x, m):
    return ((x + m - 1) // m) * m


def _vmem_limit_bytes():
    """Generation-aware scoped-VMEM limit. v5e/v6e: 128 MiB physical, v7x: 64 MiB."""
    try:
        cap = int(pltpu.get_tpu_info().vmem_capacity_bytes)
    except Exception:
        cap = 64 * 1024 * 1024                      # conservative (v7x-sized) fallback
    limit = min(cap - 16 * 1024 * 1024, 64 * 1024 * 1024)
    return max(limit, 32 * 1024 * 1024)


def _pick_tile_n(c, y_itemsize, hard, t_itemsize, has_mask, per_sample_out):
    """Pick a batch-tile size by VMEM bytes (lane padding included), not by row count."""
    vmem_limit = _vmem_limit_bytes()
    budget = vmem_limit - 8 * 1024 * 1024           # headroom inside the scoped limit

    c_pad = _round_up(c, 128)                       # last dim pads to 128 lanes in VMEM
    # Double-buffered VMEM footprint per batch row.
    per_row_vmem = 2 * c_pad * y_itemsize                              # logits block
    per_row_vmem += 2 * (128 * 4 if hard else c_pad * t_itemsize)      # targets block
    if has_mask:
        per_row_vmem += 2 * 128 * 4                 # (T, 1) mask block lane-pads to 128
    if per_sample_out:
        per_row_vmem += 2 * 8 * 4                   # lane-dense (1, T) f32 output block

    # Streamed HBM bytes per row; target MiB-class DMA blocks per grid step.
    per_row_stream = c * y_itemsize + (4 if hard else c * t_itemsize)
    tile = min(budget // max(per_row_vmem, 1),
               (8 * 1024 * 1024) // max(per_row_stream, 1))
    tile = max(8, (int(tile) // 8) * 8)             # sublane-aligned
    return tile, vmem_limit


def _tile_loss(y_ref, t_ref, hard):
    """Per-row cross entropy for one (T, C) tile. Returns (T, 1) f32."""
    y = y_ref[...].astype(jnp.float32)              # cast-on-load; HBM traffic stays native dtype
    y_max = jnp.max(y, axis=1, keepdims=True)
    lse = jnp.log(jnp.sum(jnp.exp(y - y_max), axis=1, keepdims=True)) + y_max   # (T, 1)
    if hard:
        idx = t_ref[...]                            # (T, 1) int32 class indices
        col = jax.lax.broadcasted_iota(jnp.int32, y.shape, 1)
        picked = jnp.sum(jnp.where(col == idx, y, 0.0), axis=1, keepdims=True)  # y[n, idx[n]]
        return lse - picked
    t = t_ref[...].astype(jnp.float32)              # (T, C) soft targets
    t_sum = jnp.sum(t, axis=1, keepdims=True)
    ty = jnp.sum(t * y, axis=1, keepdims=True)
    # -(t * (y - lse)).sum(1) == t.sum(1)*lse - (t*y).sum(1); no (T, C) log_softmax temporary.
    return t_sum * lse - ty


def _ce_rows_kernel(*refs, hard, has_mask, n_rows, tile_rows, lane_dense):
    if has_mask:
        y_ref, t_ref, m_ref, out_ref = refs
    else:
        y_ref, t_ref, out_ref = refs
        m_ref = None
    loss = _tile_loss(y_ref, t_ref, hard)                                # (T, 1)
    if m_ref is not None:
        loss = loss * m_ref[...].astype(jnp.float32)
    # Ragged last tile handled in-kernel (no wrapper padding): zero rows past the batch size.
    rows = pl.program_id(0) * tile_rows + jax.lax.broadcasted_iota(jnp.int32, loss.shape, 0)
    loss = jnp.where(rows < n_rows, loss, 0.0)
    if lane_dense:
        out_ref[...] = jnp.transpose(loss, (1, 0))   # (1, T): unmasked lane-dense store (XLU work)
    else:
        out_ref[...] = loss


def _ce_mean_kernel(*refs, hard, has_mask, n_rows, tile_rows, tiles_per_split):
    if has_mask:
        y_ref, t_ref, m_ref, out_ref = refs
    else:
        y_ref, t_ref, out_ref = refs
        m_ref = None
    j = pl.program_id(1)

    @pl.when(j == 0)
    def _():
        out_ref[...] = jnp.zeros_like(out_ref)

    loss = _tile_loss(y_ref, t_ref, hard)                                # (T, 1)
    if m_ref is not None:
        loss = loss * m_ref[...].astype(jnp.float32)
    # Logical (unclamped) tile index: zeros out both the ragged tail and any clamped duplicate
    # tile that a non-even split across the two v7x TensorCores produces.
    tile_idx = pl.program_id(0) * tiles_per_split + j
    rows = tile_idx * tile_rows + jax.lax.broadcasted_iota(jnp.int32, loss.shape, 0)
    loss = jnp.where(rows < n_rows, loss, 0.0)
    out_ref[...] += jnp.sum(loss, axis=0, keepdims=True)                 # (1, 1) per-split partial


def cross_entropy_pallas(y, target, mask=None, reduce=True, *, tile_rows=None):
    """Pallas equivalent of the PyTorch cross_entropy helper."""
    y = jnp.asarray(y)                               # no f32 upcast in HBM (mem-bound kernel)
    target = jnp.asarray(target)
    N, C = y.shape
    hard = target.ndim == 1

    if hard:
        t = target.astype(jnp.int32).reshape(N, 1)
        t_itemsize = 4
    else:
        t = target
        t_itemsize = t.dtype.itemsize

    has_mask = mask is not None
    if has_mask:
        m = jnp.asarray(mask).reshape(N, 1)

    if tile_rows is None:
        tile_n, vmem_limit = _pick_tile_n(C, y.dtype.itemsize, hard, t_itemsize,
                                          has_mask, per_sample_out=not reduce)
    else:
        tile_n = max(8, (int(tile_rows) // 8) * 8)   # override hook (mostly for testing)
        vmem_limit = _vmem_limit_bytes()

    if tile_n >= N:
        tile_n = N                                   # single full-extent tile (any N allowed)
    elif tile_n >= 128:
        tile_n = (tile_n // 128) * 128               # enables lane-dense per-sample output blocks
    num_tiles = pl.cdiv(N, tile_n)
    lane_dense_out = (num_tiles == 1) or (tile_n % 128 == 0)

    y_spec_shape = (tile_n, C)
    t_spec_shape = (tile_n, 1 if hard else C)

    if reduce:
        # v7x: shard the batch reduction across the two TensorCores (neutral on v5e/v6e).
        num_splits = min(2, num_tiles)
        tiles_per_split = pl.cdiv(num_tiles, num_splits)
        last_tile = num_tiles - 1
        if num_splits * tiles_per_split > num_tiles:
            def blk(s, j):                           # clamp the (duplicate) overhanging tile
                return (jnp.minimum(s * tiles_per_split + j, last_tile), 0)
        else:
            def blk(s, j):
                return (s * tiles_per_split + j, 0)

        in_specs = [pl.BlockSpec(y_spec_shape, blk), pl.BlockSpec(t_spec_shape, blk)]
        operands = [y, t]
        if has_mask:
            in_specs.append(pl.BlockSpec((tile_n, 1), blk))
            operands.append(m)

        kernel = functools.partial(_ce_mean_kernel, hard=hard, has_mask=has_mask,
                                   n_rows=N, tile_rows=tile_n,
                                   tiles_per_split=tiles_per_split)
        partials = pl.pallas_call(
            kernel,
            out_shape=jax.ShapeDtypeStruct((num_splits, 1), jnp.float32),
            grid=(num_splits, tiles_per_split),
            in_specs=in_specs,
            out_specs=pl.BlockSpec((1, 1), lambda s, j: (s, 0)),
            compiler_params=pltpu.CompilerParams(
                dimension_semantics=("parallel", "arbitrary"),
                vmem_limit_bytes=vmem_limit),
        )(*operands)
        return jnp.sum(partials) * (1.0 / N)

    # reduce=False: per-sample losses.
    in_specs = [pl.BlockSpec(y_spec_shape, lambda i: (i, 0)),
                pl.BlockSpec(t_spec_shape, lambda i: (i, 0))]
    operands = [y, t]
    if has_mask:
        in_specs.append(pl.BlockSpec((tile_n, 1), lambda i: (i, 0)))
        operands.append(m)

    if lane_dense_out:
        out_shape = jax.ShapeDtypeStruct((1, N), jnp.float32)
        out_spec = pl.BlockSpec((1, tile_n), lambda i: (0, i))
    else:                                            # huge-C fallback: tiny row tiles (< 128)
        out_shape = jax.ShapeDtypeStruct((N, 1), jnp.float32)
        out_spec = pl.BlockSpec((tile_n, 1), lambda i: (i, 0))

    kernel = functools.partial(_ce_rows_kernel, hard=hard, has_mask=has_mask,
                               n_rows=N, tile_rows=tile_n, lane_dense=lane_dense_out)
    out = pl.pallas_call(
        kernel,
        out_shape=out_shape,
        grid=(num_tiles,),
        in_specs=in_specs,
        out_specs=out_spec,
        compiler_params=pltpu.CompilerParams(
            dimension_semantics=("parallel",),
            vmem_limit_bytes=vmem_limit),
    )(*operands)
    return out[0] if lane_dense_out else out[:, 0]


class CrossEntropyPallas:
    """Mirror of the PyTorch CrossEntropy nn.Module (no parameters)."""

    def __init__(self, reduce):
        self.reduce = reduce

    def __call__(self, y, target, mask=None, *args, **kwargs):
        # target.detach() -> stop_gradient (no-op for the forward pass)
        return cross_entropy_pallas(y, jax.lax.stop_gradient(target), mask, self.reduce)


def _reference(y, target, mask=None, reduce=True):
    y = jnp.asarray(y, jnp.float32)
    target = jnp.asarray(target)
    if target.ndim == 1:
        t = jax.nn.one_hot(target, y.shape[1], dtype=jnp.float32)
    else:
        t = target.astype(jnp.float32)
    loss = -(t * jax.nn.log_softmax(y, axis=1)).sum(1)
    if mask is not None:
        loss = jnp.asarray(mask, jnp.float32) * loss
    return loss.mean() if reduce else loss


if __name__ == "__main__":
    key = jax.random.PRNGKey(0)
    k1, k2, k3, k4, k5, k6, k7, k8, k9, k10, k11 = jax.random.split(key, 11)

    mod_reduce = CrossEntropyPallas(reduce=True)
    mod_no_reduce = CrossEntropyPallas(reduce=False)

    # Small shapes consistent with the module (batch of logits over C classes).
    N, C = 8, 32
    y = jax.random.normal(k1, (N, C), dtype=jnp.float32)
    hard_target = jax.random.randint(k2, (N,), 0, C, dtype=jnp.int32)
    soft_target = jax.nn.softmax(jax.random.normal(k3, (N, C), dtype=jnp.float32), axis=1)
    mask = (jax.random.uniform(k4, (N,)) > 0.5).astype(jnp.float32)

    out1 = mod_reduce(y, hard_target)                 # hard targets, reduced, no mask (specialized)
    out2 = mod_no_reduce(y, soft_target, mask)        # soft targets, masked, per-sample
    out3 = mod_reduce(y, soft_target, mask)           # soft targets, masked, reduced

    # Ragged batch + narrow dtype: non-multiple-of-8 batch, bf16 logits, hard targets.
    N2, C2 = 13, 160
    y2 = jax.random.normal(k5, (N2, C2), dtype=jnp.bfloat16)
    hard_target2 = jax.random.randint(k6, (N2,), 0, C2, dtype=jnp.int32)
    mask2 = (jax.random.uniform(k7, (N2,)) > 0.3).astype(jnp.float32)
    out4 = mod_no_reduce(y2, hard_target2, mask2)

    # Multi-tile / ragged-last-tile / core-split paths, forced small tile for coverage.
    N3, C3 = 300, 256
    y3 = jax.random.normal(k8, (N3, C3), dtype=jnp.float32)
    soft_target3 = jax.nn.softmax(jax.random.normal(k9, (N3, C3), dtype=jnp.float32), axis=1)
    mask3 = (jax.random.uniform(k10, (N3,)) > 0.5).astype(jnp.float32)
    out5 = cross_entropy_pallas(y3, soft_target3, mask3, reduce=False, tile_rows=128)  # lane-dense
    out6 = cross_entropy_pallas(y3, soft_target3, mask3, reduce=True, tile_rows=128)   # split mean

    # Huge-C-style fallback path (tile < 128 -> column output), hard targets, no mask.
    N4, C4 = 100, 64
    y4 = jax.random.normal(k11, (N4, C4), dtype=jnp.float32)
    hard_target4 = jax.random.randint(k2, (N4,), 0, C4, dtype=jnp.int32)
    out7 = cross_entropy_pallas(y4, hard_target4, None, reduce=False, tile_rows=24)
    out8 = cross_entropy_pallas(y4, hard_target4, None, reduce=True, tile_rows=24)

    jax.block_until_ready((out1, out2, out3, out4, out5, out6, out7, out8))

    assert jnp.allclose(out1, _reference(y, hard_target, None, True), atol=1e-4, rtol=1e-4)
    assert jnp.allclose(out2, _reference(y, soft_target, mask, False), atol=1e-4, rtol=1e-4)
    assert jnp.allclose(out3, _reference(y, soft_target, mask, True), atol=1e-4, rtol=1e-4)
    assert jnp.allclose(out4, _reference(y2, hard_target2, mask2, False), atol=1e-4, rtol=1e-4)
    assert jnp.allclose(out5, _reference(y3, soft_target3, mask3, False), atol=5e-4, rtol=5e-4)
    assert jnp.allclose(out6, _reference(y3, soft_target3, mask3, True), atol=5e-4, rtol=5e-4)
    assert jnp.allclose(out7, _reference(y4, hard_target4, None, False), atol=1e-4, rtol=1e-4)
    assert jnp.allclose(out8, _reference(y4, hard_target4, None, True), atol=1e-4, rtol=1e-4)

    print("KERNEL_OK")
</pallas_src>

<mosaic_0001>
module attributes {stable_mosaic.version = 11 : i64} {
  func.func @_ce_mean_kernel(%arg0: i32, %arg1: i32, %arg2: memref<8x32xf32, #tpu.memory_space<vmem>>, %arg3: memref<8x1xi32, #tpu.memory_space<vmem>>, %arg4: memref<1x1xf32, #tpu.memory_space<vmem>>) attributes {dimension_semantics = [#tpu.dimension_semantics<parallel>, #tpu.dimension_semantics<arbitrary>], iteration_bounds = array<i64: 1, 1>, scalar_prefetch = 0 : i64, scratch_operands = 0 : i64, tpu.core_type = #tpu.core_type<tc>, window_params = [{transform_indices = @transform_0, window_bounds = array<i64: 8, 32>}, {transform_indices = @transform_1, window_bounds = array<i64: 8, 1>}, {transform_indices = @transform_2, window_bounds = array<i64: 1, 1>}]} {
    %c0_i32 = arith.constant 0 : i32
    %0 = arith.cmpi eq, %arg1, %c0_i32 : i32
    %1 = arith.extui %0 : i1 to i32
    %c0_i32_0 = arith.constant 0 : i32
    %2 = arith.cmpi ne, %1, %c0_i32_0 : i32
    scf.if %2 {
      %cst_14 = arith.constant 0.000000e+00 : f32
      %37 = vector.broadcast %cst_14 : f32 to vector<1x1xf32>
      %c0_15 = arith.constant 0 : index
      %c0_16 = arith.constant 0 : index
      %38 = vector.load %arg4[%c0_15, %c0_16] : memref<1x1xf32, #tpu.memory_space<vmem>>, vector<1x1xf32>
      tpu.vector_store %arg4[%c0_15, %c0_16], %37 {strides = array<i32>} : memref<1x1xf32, #tpu.memory_space<vmem>>, vector<1x1xf32>,
    } else {
    }
    %c0 = arith.constant 0 : index
    %c0_1 = arith.constant 0 : index
    %3 = vector.load %arg2[%c0, %c0_1] : memref<8x32xf32, #tpu.memory_space<vmem>>, vector<8x32xf32>
    %cst = arith.constant dense<0xFF800000> : vector<8xf32>
    %4 = vector.multi_reduction <maximumf>, %3, %cst [1] : vector<8x32xf32> to vector<8xf32>
    %5 = vector.shape_cast %4 : vector<8xf32> to vector<8x1xf32>
    %6 = vector.broadcast %5 : vector<8x1xf32> to vector<8x32xf32>
    %7 = arith.subf %3, %6 : vector<8x32xf32>
    %8 = math.exp %7 : vector<8x32xf32>
    %cst_2 = arith.constant dense<0.000000e+00> : vector<8xf32>
    %9 = vector.multi_reduction <add>, %8, %cst_2 [1] : vector<8x32xf32> to vector<8xf32>
    %10 = vector.shape_cast %9 : vector<8xf32> to vector<8x1xf32>
    %11 = math.log %10 : vector<8x1xf32>
    %12 = arith.addf %11, %5 : vector<8x1xf32>
    %c0_3 = arith.constant 0 : index
    %c0_4 = arith.constant 0 : index
    %13 = vector.load %arg3[%c0_3, %c0_4] : memref<8x1xi32, #tpu.memory_space<vmem>>, vector<8x1xi32>
    %14 = tpu.iota {dimensions = array<i32: 1>} : vector<8x32xi32>
    %15 = vector.broadcast %13 : vector<8x1xi32> to vector<8x32xi32>
    %16 = arith.cmpi eq, %14, %15 : vector<8x32xi32>
    %cst_5 = arith.constant 0.000000e+00 : f32
    %17 = vector.broadcast %cst_5 : f32 to vector<8x32xf32>
    %18 = arith.select %16, %3, %17 : vector<8x32xi1>, vector<8x32xf32>
    %cst_6 = arith.constant dense<0.000000e+00> : vector<8xf32>
    %19 = vector.multi_reduction <add>, %18, %cst_6 [1] : vector<8x32xf32> to vector<8xf32>
    %20 = vector.shape_cast %19 : vector<8xf32> to vector<8x1xf32>
    %21 = arith.subf %12, %20 : vector<8x1xf32>
    %c1_i32 = arith.constant 1 : i32
    %22 = arith.muli %arg0, %c1_i32 : i32
    %23 = arith.addi %22, %arg1 : i32
    %c8_i32 = arith.constant 8 : i32
    %24 = arith.muli %23, %c8_i32 : i32
    %25 = tpu.iota {dimensions = array<i32: 0>} : vector<8x1xi32>
    %26 = vector.broadcast %24 : i32 to vector<8x1xi32>
    %27 = arith.addi %26, %25 : vector<8x1xi32>
    %c8_i32_7 = arith.constant 8 : i32
    %28 = vector.broadcast %c8_i32_7 : i32 to vector<8x1xi32>
    %29 = arith.cmpi slt, %27, %28 : vector<8x1xi32>
    %cst_8 = arith.constant 0.000000e+00 : f32
    %30 = vector.broadcast %cst_8 : f32 to vector<8x1xf32>
    %31 = arith.select %29, %21, %30 : vector<8x1xi1>, vector<8x1xf32>
    %c0_9 = arith.constant 0 : index
    %c0_10 = arith.constant 0 : index
    %32 = vector.load %arg4[%c0_9, %c0_10] : memref<1x1xf32, #tpu.memory_space<vmem>>, vector<1x1xf32>
    %cst_11 = arith.constant dense<0.000000e+00> : vector<1xf32>
    %33 = vector.multi_reduction <add>, %31, %cst_11 [0] : vector<8x1xf32> to vector<1xf32>
    %34 = vector.shape_cast %33 : vector<1xf32> to vector<1x1xf32>
    %35 = arith.addf %32, %34 : vector<1x1xf32>
    %c0_12 = arith.constant 0 : index
    %c0_13 = arith.constant 0 : index
    %36 = vector.load %arg4[%c0_12, %c0_13] : memref<1x1xf32, #tpu.memory_space<vmem>>, vector<1x1xf32>
    tpu.vector_store %arg4[%c0_12, %c0_13], %35 {strides = array<i32>} : memref<1x1xf32, #tpu.memory_space<vmem>>, vector<1x1xf32>,
    return
  }
  func.func @transform_0(%arg0: i32, %arg1: i32) -> (i32, i32) {
    %c1_i32 = arith.constant 1 : i32
    %0 = arith.muli %arg0, %c1_i32 : i32
    %1 = arith.addi %0, %arg1 : i32
    %c0_i32 = arith.constant 0 : i32
    %c0_i32_0 = arith.constant 0 : i32
    return %1, %c0_i32 : i32, i32
  }
  func.func @transform_1(%arg0: i32, %arg1: i32) -> (i32, i32) {
    %c1_i32 = arith.constant 1 : i32
    %0 = arith.muli %arg0, %c1_i32 : i32
    %1 = arith.addi %0, %arg1 : i32
    %c0_i32 = arith.constant 0 : i32
    %c0_i32_0 = arith.constant 0 : i32
    return %1, %c0_i32 : i32, i32
  }
  func.func @transform_2(%arg0: i32, %arg1: i32) -> (i32, i32) {
    %c0_i32 = arith.constant 0 : i32
    %c0_i32_0 = arith.constant 0 : i32
    return %arg0, %c0_i32 : i32, i32
  }
}

</mosaic_0001>

<bundles_post_ra>
// kernel: tpu_custom_call.1
= control target key start
LH: loop header
LB: loop body
LE: loop exit
PB: predicated region body
PF: predicated region fallthrough
CT: control target
= control target key end

     0   :  { %vm53_vm0 = vcmask 261120   ;;  %s190_s0 = inlined_call_operand.vmem [shape: f32[8,32], index: 0, kind: input, shape index: {}]   ;;  %s191_s1 = inlined_call_operand.vmem [shape: s32[8,1], index: 1, kind: input, shape index: {}]   ;;  %s192_s2 = inlined_call_operand.hbm [shape: f32[1,1], index: 2, kind: output, shape index: {}]  }
   0x1   :  { %v52_v0 = vld [vmem:[%s190_s0] sm:$0xff] }
   0x2   :  { %7 = vsyncpa [#allocation3], 0  ;;  %v54_v1 = vsel %vm53_vm0, %v52_v0, -inf  ;;  %v158_v2 = vmov 0   ;;  %v66_v3 = vld [vmem:[%s191_s1] sm:$0xff]  ;;  %v67_v9 = vlaneseq  ;;  %vm50_vm2 = vcmask 0  }
   0x3   :  { %127 = vset.pattern.permute.xlu0 %v158_v2  ;;  %v159_v14 = vmov 0.0   ;;  %s160_s0 = smov [#allocation2]   ;;  %s103_s15 = sshll.u32 %s192_s2, 4  ;;  %s104_s15 = int_to_ptr.hbm [resolvable:$true] %s103_s15 }
   0x4   :  { %55 = vmax.xlane.f32.xlu0 %v54_v1  ;;  %v68_v10 = vand.u32 127, %v67_v9  ;;  %51 = vst.msk [vmem:[#allocation2] sm:$0x1] %vm50_vm2, %v159_v14  ;;  %s101_s1 = sshll.u32 %s160_s0, 4  ;;  %s102_s1 = int_to_ptr.vmem [resolvable:$true] %s101_s1 }
   0xb   :  { %v86_v26 = vld [vmem:[#allocation2] sm:$0x1] }
  0x18   :  { %70 = vperm.xlu0 %127, %v66_v3  }
  0x77   :  { %v56_v4 = vpop.xlane.xlu0 %55 }
  0x78   :  { %v57_v5 = vsub.f32 %v52_v0, %v56_v4 }
  0x7a   :  { %v58_v6 = vmul.f32 1.442695, %v57_v5 }
  0x7c   :  { %128 = vpow2.f32 %v58_v6 }
  0x82   :  { %v129_v7 = vpop.eup %128 }
  0x83   :  { %v60_v8 = vsel %vm53_vm0, %v129_v7, 0.0 }
  0x84   :  { %61 = vadd.xlane.f32.xlu1 %v60_v8 }
  0x8a   :  { %v71_v11 = vpop.permute.xlu0 %70 }
  0x8b   :  { %vm72_vm1 = vcmp.eq.s32.totalorder %v68_v10, %v71_v11 }
  0x8c   :  { %v73_v12 = vsel %vm72_vm1, %v52_v0, 0.0 }
  0x8d   :  { %v74_v13 = vsel %vm53_vm0, %v73_v12, 0.0 }
  0x8e   :  { %75 = vadd.xlane.f32.xlu1 %v74_v13 }
  0xf7   :  { %v62_v15 = vpop.xlane.xlu1 %61 }
  0xf8   :  { %130 = vlog2.f32 %v62_v15 }
  0xfe   :  { %v131_v16 = vpop.eup %130 }
  0xff   :  { %v64_v17 = vmul.f32 0.6931472, %v131_v16 }
 0x101   :  { %v65_v18 = vadd.f32 %v64_v17, %v56_v4  ;;  %v76_v19 = vpop.xlane.xlu1 %75 }
 0x103   :  { %v77_v20 = vsub.f32 %v65_v18, %v76_v19 }
 0x105   :  { %v87_v21 = vrot.slane %v77_v20, 4 }
 0x107   :  { %v88_v22 = vadd.f32 %v87_v21, %v77_v20 }
 0x109   :  { %v89_v23 = vrot.slane %v88_v22, 2 }
 0x10b   :  { %v90_v24 = vadd.f32 %v89_v23, %v88_v22 }
 0x10d   :  { %v91_v25 = vrot.slane %v90_v24, 1 }
 0x10f   :  { %v92_v27 = vadd.f32 %v91_v25, %v90_v24 }
 0x111   :  { %v93_v28 = vadd.f32 %v92_v27, %v86_v26 }
 0x113   :  { %95 = vst.msk [vmem:[#allocation2] sm:$0x1] %vm50_vm2, %v93_v28 }
 0x114   :  { %106 = dma.vmem_to_hbm [thread:$0]  %s102_s1, 16, %s104_s15, [#allocation3]  }
 0x115   :  { %156 = dma.done.wait [#allocation3], 16  }
 0x116   :  { %157 = vsyncadd [#allocation3], 4294967280 }
 0x117   :  { %111 = vsyncpa [#allocation3], 1 }

</bundles_post_ra>
